<compile_context>
chip_gen: v7x
topology: tpu7x:2x2x1
jax: 0.10.0
libtpu: 0.0.40
codegen_flags: <defaults>
</compile_context>

<pallas_src>
import functools

import jax
import jax.numpy as jnp
from jax.experimental import pallas as pl
from jax.experimental.pallas import tpu as pltpu


def _softplus(z):
    # softplus(z) = max(z, 0) + log1p(exp(-|z|)).
    # Numerically matches torch.nn.functional.softplus (beta=1, threshold=20):
    # for z > 20 the log1p term is < 2e-9, i.e. linear pass-through.
    return jnp.maximum(z, 0.0) + jnp.log1p(jnp.exp(-jnp.abs(z)))


def _heads(z, out_ref):
    """Write [mu || softplus(logsig)] into the packed output ref."""
    L = out_ref.shape[1] // 2
    col = jax.lax.broadcasted_iota(jnp.int32, z.shape, 1)
    out_ref[...] = jnp.where(col < L, z, _softplus(z)).astype(out_ref.dtype)


def gauss_layer_kernel_proj(x_ref, w1_ref, b1_ref, wh_ref, bh_ref, out_ref):
    """h = tanh(x@W1+b1); z = h@[Wmu||Wls] + [bmu||bls]; out = [mu||softplus]."""
    h = jnp.tanh(
        jnp.dot(x_ref[...], w1_ref[...], preferred_element_type=jnp.float32)
        + b1_ref[...]
    )
    z = jnp.dot(h.astype(wh_ref.dtype), wh_ref[...],
                preferred_element_type=jnp.float32) + bh_ref[...]
    _heads(z, out_ref)


def gauss_layer_kernel_noproj(x_ref, wh_ref, bh_ref, out_ref):
    """do_projection=False: fused heads applied to x directly."""
    z = jnp.dot(x_ref[...], wh_ref[...],
                preferred_element_type=jnp.float32) + bh_ref[...]
    _heads(z, out_ref)


@functools.partial(jax.jit, static_argnames=("do_projection", "block_batch"))
def gauss_layer(x, params, do_projection=True, block_batch=512):
    """x: [B, inputs]. Returns (mu, sig), each [B, latent_z]."""
    B, F = x.shape
    two_l = params["wh"].shape[1]
    L = two_l // 2

    # Batch tile: multiple of 8 sublanes, capped (fits comfortably in scoped VMEM
    # even on v5e/v7x at these feature widths). Pad ragged batches.
    tb = min(block_batch, max(8, ((B + 7) // 8) * 8))
    Bp = pl.cdiv(B, tb) * tb
    if Bp != B:
        x = jnp.pad(x, ((0, Bp - B), (0, 0)))
    grid = (Bp // tb,)

    if do_projection:
        hidden = params["w1"].shape[1]
        args = (x, params["w1"], params["b1"], params["wh"], params["bh"])
        kernel = gauss_layer_kernel_proj
        in_specs = [
            pl.BlockSpec((tb, F), lambda i: (i, 0)),          # x: tiled over batch
            pl.BlockSpec((F, hidden), lambda i: (0, 0)),      # resident weights
            pl.BlockSpec((1, hidden), lambda i: (0, 0)),
            pl.BlockSpec((hidden, two_l), lambda i: (0, 0)),
            pl.BlockSpec((1, two_l), lambda i: (0, 0)),
        ]
        flops = 2 * Bp * (F * hidden + hidden * two_l)
        transcendentals = Bp * (hidden + two_l)
    else:
        args = (x, params["wh"], params["bh"])
        kernel = gauss_layer_kernel_noproj
        in_specs = [
            pl.BlockSpec((tb, F), lambda i: (i, 0)),
            pl.BlockSpec((F, two_l), lambda i: (0, 0)),
            pl.BlockSpec((1, two_l), lambda i: (0, 0)),
        ]
        flops = 2 * Bp * F * two_l
        transcendentals = Bp * two_l

    bytes_accessed = int(
        sum(a.size * a.dtype.itemsize for a in args)
        + Bp * two_l * x.dtype.itemsize
    )

    out = pl.pallas_call(
        kernel,
        out_shape=jax.ShapeDtypeStruct((Bp, two_l), x.dtype),
        grid=grid,
        in_specs=in_specs,
        out_specs=pl.BlockSpec((tb, two_l), lambda i: (i, 0)),
        compiler_params=pltpu.CompilerParams(
            dimension_semantics=("parallel",)),
        cost_estimate=pl.CostEstimate(
            flops=flops,
            transcendentals=transcendentals,
            bytes_accessed=bytes_accessed),
    )(*args)

    mu = out[:B, :L]
    sig = out[:B, L:]
    return mu, sig


def init_gauss_layer_params(key, inputs, hidden_size, latent_z, do_projection=True,
                            dtype=jnp.float32):
    """Weights stored pre-transposed as [in, out]; mu/logsig heads fused."""
    hidden = hidden_size if do_projection else inputs
    keys = jax.random.split(key, 6)
    s1 = 1.0 / jnp.sqrt(inputs)
    s2 = 1.0 / jnp.sqrt(hidden)
    wmu = jax.random.uniform(keys[2], (hidden, latent_z), jnp.float32, -s2, s2)
    bmu = jax.random.uniform(keys[3], (1, latent_z), jnp.float32, -s2, s2)
    wls = jax.random.uniform(keys[4], (hidden, latent_z), jnp.float32, -s2, s2)
    bls = jax.random.uniform(keys[5], (1, latent_z), jnp.float32, -s2, s2)
    params = {
        "wh": jnp.concatenate([wmu, wls], axis=1).astype(dtype),
        "bh": jnp.concatenate([bmu, bls], axis=1).astype(dtype),
    }
    if do_projection:
        params["w1"] = jax.random.uniform(keys[0], (inputs, hidden), jnp.float32,
                                          -s1, s1).astype(dtype)
        params["b1"] = jax.random.uniform(keys[1], (1, hidden), jnp.float32,
                                          -s1, s1).astype(dtype)
    return params


def _reference(x, params, do_projection=True):
    """Pure-JAX reference (block-matmul with fused head weights is identical to
    two separate nn.Linear heads)."""
    h = x
    if do_projection:
        h = jnp.tanh(x @ params["w1"] + params["b1"])
    L = params["wh"].shape[1] // 2
    z = h @ params["wh"] + params["bh"]
    return z[:, :L], jax.nn.softplus(z[:, L:])


if __name__ == "__main__":
    key = jax.random.PRNGKey(0)
    k_x, k_p, k_x2 = jax.random.split(key, 3)

    batch, inputs, hidden_size, latent_z = 8, 32, 32, 16
    x = jax.random.normal(k_x, (batch, inputs), jnp.float32)
    params = init_gauss_layer_params(k_p, inputs, hidden_size, latent_z,
                                     do_projection=True)

    mu, sig = gauss_layer(x, params, do_projection=True)
    jax.block_until_ready((mu, sig))

    mu_ref, sig_ref = _reference(x, params, do_projection=True)
    assert mu.shape == (batch, latent_z) and sig.shape == (batch, latent_z)
    assert jnp.allclose(mu, mu_ref, atol=1e-5, rtol=1e-5)
    assert jnp.allclose(sig, sig_ref, atol=1e-5, rtol=1e-5)
    assert bool(jnp.all(sig > 0.0))

    # Ragged batch (exercises batch padding) + do_projection=False path.
    x2 = jax.random.normal(k_x2, (11, inputs), jnp.float32)
    params_np = init_gauss_layer_params(k_p, inputs, hidden_size, latent_z,
                                        do_projection=False)
    mu2, sig2 = gauss_layer(x2, params_np, do_projection=False)
    jax.block_until_ready((mu2, sig2))
    mu2_ref, sig2_ref = _reference(x2, params_np, do_projection=False)
    assert mu2.shape == (11, latent_z) and sig2.shape == (11, latent_z)
    assert jnp.allclose(mu2, mu2_ref, atol=1e-5, rtol=1e-5)
    assert jnp.allclose(sig2, sig2_ref, atol=1e-5, rtol=1e-5)
    assert bool(jnp.all(sig2 > 0.0))

    print("KERNEL_OK")
</pallas_src>

<mosaic_0001>
module attributes {stable_mosaic.version = 11 : i64} {
  func.func @gauss_layer_kernel_proj(%arg0: i32, %arg1: memref<8x32xf32, #tpu.memory_space<vmem>>, %arg2: memref<32x32xf32, #tpu.memory_space<vmem>>, %arg3: memref<1x32xf32, #tpu.memory_space<vmem>>, %arg4: memref<32x32xf32, #tpu.memory_space<vmem>>, %arg5: memref<1x32xf32, #tpu.memory_space<vmem>>, %arg6: memref<8x32xf32, #tpu.memory_space<vmem>>) attributes {dimension_semantics = [#tpu.dimension_semantics<parallel>], iteration_bounds = array<i64: 1>, scalar_prefetch = 0 : i64, scratch_operands = 0 : i64, tpu.core_type = #tpu.core_type<tc>, window_params = [{transform_indices = @transform_0, window_bounds = array<i64: 8, 32>}, {pipeline_mode = #tpu.pipeline_mode<synchronous>, transform_indices = @transform_1, window_bounds = array<i64: 32, 32>}, {pipeline_mode = #tpu.pipeline_mode<synchronous>, transform_indices = @transform_2, window_bounds = array<i64: 1, 32>}, {pipeline_mode = #tpu.pipeline_mode<synchronous>, transform_indices = @transform_3, window_bounds = array<i64: 32, 32>}, {pipeline_mode = #tpu.pipeline_mode<synchronous>, transform_indices = @transform_4, window_bounds = array<i64: 1, 32>}, {transform_indices = @transform_5, window_bounds = array<i64: 8, 32>}]} {
    %c0 = arith.constant 0 : index
    %c0_0 = arith.constant 0 : index
    %0 = vector.load %arg1[%c0, %c0_0] : memref<8x32xf32, #tpu.memory_space<vmem>>, vector<8x32xf32>
    %c0_1 = arith.constant 0 : index
    %c0_2 = arith.constant 0 : index
    %1 = vector.load %arg2[%c0_1, %c0_2] : memref<32x32xf32, #tpu.memory_space<vmem>>, vector<32x32xf32>
    %cst = arith.constant dense<0.000000e+00> : vector<8x32xf32>
    %2 = tpu.matmul %0, %1, %cst {dimension_numbers = #tpu.dot_dimension_numbers<[1], [0], [0], [1], [0, 0, 1, 1], [], []>} : vector<8x32xf32>, vector<32x32xf32>, vector<8x32xf32> -> vector<8x32xf32>
    %c0_3 = arith.constant 0 : index
    %c0_4 = arith.constant 0 : index
    %3 = vector.load %arg3[%c0_3, %c0_4] : memref<1x32xf32, #tpu.memory_space<vmem>>, vector<1x32xf32>
    %4 = vector.broadcast %3 : vector<1x32xf32> to vector<8x32xf32>
    %5 = arith.addf %2, %4 : vector<8x32xf32>
    %6 = math.tanh %5 : vector<8x32xf32>
    %c0_5 = arith.constant 0 : index
    %c0_6 = arith.constant 0 : index
    %7 = vector.load %arg4[%c0_5, %c0_6] : memref<32x32xf32, #tpu.memory_space<vmem>>, vector<32x32xf32>
    %cst_7 = arith.constant dense<0.000000e+00> : vector<8x32xf32>
    %8 = tpu.matmul %6, %7, %cst_7 {dimension_numbers = #tpu.dot_dimension_numbers<[1], [0], [0], [1], [0, 0, 1, 1], [], []>} : vector<8x32xf32>, vector<32x32xf32>, vector<8x32xf32> -> vector<8x32xf32>
    %c0_8 = arith.constant 0 : index
    %c0_9 = arith.constant 0 : index
    %9 = vector.load %arg5[%c0_8, %c0_9] : memref<1x32xf32, #tpu.memory_space<vmem>>, vector<1x32xf32>
    %10 = vector.broadcast %9 : vector<1x32xf32> to vector<8x32xf32>
    %11 = arith.addf %8, %10 : vector<8x32xf32>
    %12 = tpu.iota {dimensions = array<i32: 1>} : vector<8x32xi32>
    %c16_i32 = arith.constant 16 : i32
    %13 = vector.broadcast %c16_i32 : i32 to vector<8x32xi32>
    %14 = arith.cmpi slt, %12, %13 : vector<8x32xi32>
    %cst_10 = arith.constant 0.000000e+00 : f32
    %15 = vector.broadcast %cst_10 : f32 to vector<8x32xf32>
    %16 = arith.maximumf %11, %15 : vector<8x32xf32>
    %17 = math.absf %11 : vector<8x32xf32>
    %cst_11 = arith.constant 0.000000e+00 : f32
    %18 = vector.broadcast %cst_11 : f32 to vector<8x32xf32>
    %19 = arith.subf %18, %17 : vector<8x32xf32>
    %20 = math.exp %19 : vector<8x32xf32>
    %21 = math.log1p %20 : vector<8x32xf32>
    %22 = arith.addf %16, %21 : vector<8x32xf32>
    %23 = arith.select %14, %11, %22 : vector<8x32xi1>, vector<8x32xf32>
    %c0_12 = arith.constant 0 : index
    %c0_13 = arith.constant 0 : index
    %24 = vector.load %arg6[%c0_12, %c0_13] : memref<8x32xf32, #tpu.memory_space<vmem>>, vector<8x32xf32>
    tpu.vector_store %arg6[%c0_12, %c0_13], %23 {strides = array<i32>} : memref<8x32xf32, #tpu.memory_space<vmem>>, vector<8x32xf32>,
    return
  }
  func.func @transform_0(%arg0: i32) -> (i32, i32) {
    %c0_i32 = arith.constant 0 : i32
    %c0_i32_0 = arith.constant 0 : i32
    return %arg0, %c0_i32 : i32, i32
  }
  func.func @transform_1(%arg0: i32) -> (i32, i32) {
    %c0_i32 = arith.constant 0 : i32
    %c0_i32_0 = arith.constant 0 : i32
    %c0_i32_1 = arith.constant 0 : i32
    return %c0_i32, %c0_i32_0 : i32, i32
  }
  func.func @transform_2(%arg0: i32) -> (i32, i32) {
    %c0_i32 = arith.constant 0 : i32
    %c0_i32_0 = arith.constant 0 : i32
    %c0_i32_1 = arith.constant 0 : i32
    return %c0_i32, %c0_i32_0 : i32, i32
  }
  func.func @transform_3(%arg0: i32) -> (i32, i32) {
    %c0_i32 = arith.constant 0 : i32
    %c0_i32_0 = arith.constant 0 : i32
    %c0_i32_1 = arith.constant 0 : i32
    return %c0_i32, %c0_i32_0 : i32, i32
  }
  func.func @transform_4(%arg0: i32) -> (i32, i32) {
    %c0_i32 = arith.constant 0 : i32
    %c0_i32_0 = arith.constant 0 : i32
    %c0_i32_1 = arith.constant 0 : i32
    return %c0_i32, %c0_i32_0 : i32, i32
  }
  func.func @transform_5(%arg0: i32) -> (i32, i32) {
    %c0_i32 = arith.constant 0 : i32
    %c0_i32_0 = arith.constant 0 : i32
    return %arg0, %c0_i32 : i32, i32
  }
}

</mosaic_0001>

<bundles_post_ra>
// kernel: gauss_layer.1
= control target key start
LH: loop header
LB: loop body
LE: loop exit
PB: predicated region body
PF: predicated region fallthrough
CT: control target
= control target key end

     0   :  { %10 = vsyncpa [#allocation3], 0  ;;  %s480_s0 = inlined_call_operand.hbm [shape: f32[8,32], index: 0, kind: input, shape index: {}]   ;;  %s481_s1 = inlined_call_operand.hbm [shape: f32[32,32], index: 1, kind: input, shape index: {}]   ;;  %s482_s2 = inlined_call_operand.vmem [shape: f32[1,32], index: 2, kind: input, shape index: {}]   ;;  %s483_s3 = inlined_call_operand.hbm [shape: f32[32,32], index: 3, kind: input, shape index: {}]   ;;  %s484_s4 = inlined_call_operand.vmem [shape: f32[1,32], index: 4, kind: input, shape index: {}]   ;;  %s485_s5 = inlined_call_operand.vmem [shape: f32[8,32], index: 5, kind: output, shape index: {}]  }
   0x1   :  { %11 = vsyncpa [#allocation5], 0  ;;  %s388_s18 = smov [#allocation4]   ;;  %s318_s22 = scalar_lea.hbm %s481_s1, 512 }
   0x2   :  { %s27_s19 = sshll.u32 %s388_s18, 4  ;;  %p319_p0 = scmp.ne.s32.totalorder %s481_s1, %s318_s22  ;;  %s28_s19 = int_to_ptr.vmem [resolvable:$true] %s27_s19 }
   0x3   :  { %p322_p1 = scmp.lt.u32.totalorder %s318_s22, %s481_s1 }
   0x5   :  { %p324_p2 = pnand %p322_p1, %p319_p0 }
   0x7   :  { %327 = shalt.err (!%p324_p2)
}
   0x8   :  { %s328_s27 = scalar_lea.vmem %s28_s19, 512  ;;  %p333_p4 = scmp.lt.s32.totalorder %s28_s19, %s28_s19 }
   0x9   :  { %p329_p3 = scmp.ne.s32.totalorder %s28_s19, %s328_s27  ;;  %p334_p5 = scmp.lt.s32.totalorder %s328_s27, %s328_s27 }
   0xb   :  { %p335_p6 = por %p334_p5, %p333_p4 }
   0xd   :  { %p336_p7 = pnand %p335_p6, %p329_p3 }
   0xf   :  { %339 = shalt.err (!%p336_p7)
}
  0x10   :  { %s389_s28 = smov 128   ;;  %s390_s29 = smov 8  }
  0x11   :  { %33 = dma.hbm_to_vmem [thread:$0]  %s481_s1, 512, %s28_s19, [#allocation5], %s389_s28, %s389_s28, %s390_s29  }
  0x12   :  { %s391_s7 = smov [#allocation2]   ;;  %s392_s9 = smov [#allocation6]  }
  0x13   :  { %s18_s8 = sshll.u32 %s391_s7, 4  ;;  %s41_s10 = sshll.u32 %s392_s9, 4  ;;  %s19_s8 = int_to_ptr.vmem [resolvable:$true] %s18_s8  ;;  %s42_s10 = int_to_ptr.vmem [resolvable:$true] %s41_s10 }
  0x14   :  { %s340_s13 = scalar_lea.hbm %s480_s0, 128 }
  0x15   :  { %p341_p8 = scmp.ne.s32.totalorder %s480_s0, %s340_s13  ;;  %p344_p9 = scmp.lt.u32.totalorder %s340_s13, %s480_s0 }
  0x17   :  { %p346_p10 = pnand %p344_p9, %p341_p8 }
  0x19   :  { %349 = shalt.err (!%p346_p10)
}
  0x1a   :  { %s350_s1 = scalar_lea.vmem %s19_s8, 128  ;;  %p355_p12 = scmp.lt.s32.totalorder %s19_s8, %s19_s8 }
  0x1b   :  { %p351_p11 = scmp.ne.s32.totalorder %s19_s8, %s350_s1  ;;  %p356_p13 = scmp.lt.s32.totalorder %s350_s1, %s350_s1 }
  0x1d   :  { %p357_p0 = por %p356_p13, %p355_p12 }
  0x1f   :  { %p358_p1 = pnand %p357_p0, %p351_p11 }
  0x21   :  { %361 = shalt.err (!%p358_p1)
}
  0x22   :  { %21 = dma.hbm_to_vmem [thread:$0]  %s480_s0, 128, %s19_s8, [#allocation3]  }
  0x23   :  { %s362_s22 = scalar_lea.hbm %s483_s3, 512 }
  0x24   :  { %p363_p2 = scmp.ne.s32.totalorder %s483_s3, %s362_s22  ;;  %p366_p3 = scmp.lt.u32.totalorder %s362_s22, %s483_s3 }
  0x26   :  { %p368_p4 = pnand %p366_p3, %p363_p2 }
  0x28   :  { %371 = shalt.err (!%p368_p4)
}
  0x29   :  { %s372_s27 = scalar_lea.vmem %s42_s10, 512  ;;  %p377_p6 = scmp.lt.s32.totalorder %s42_s10, %s42_s10 }
  0x2a   :  { %p373_p5 = scmp.ne.s32.totalorder %s42_s10, %s372_s27  ;;  %p378_p7 = scmp.lt.s32.totalorder %s372_s27, %s372_s27 }
  0x2c   :  { %p379_p8 = por %p378_p7, %p377_p6 }
  0x2e   :  { %p380_p9 = pnand %p379_p8, %p373_p5 }
  0x30   :  { %383 = shalt.err (!%p380_p9)
}
  0x31   :  { %47 = dma.hbm_to_vmem [thread:$0]  %s483_s3, 512, %s42_s10, [#allocation5], %s389_s28, %s389_s28, %s390_s29  }
  0x32   :  { %384 = dma.done.wait [#allocation3], 128  }
  0x33   :  { %385 = vsyncadd [#allocation3], 4294967168 }
  0x34   :  { %386 = dma.done.wait [#allocation5], 1024  }
  0x35   :  { %387 = vsyncadd [#allocation5], 4294966272  ;;  %v393_v0 = vmov 0.0|0.0   ;;  %vm394_vm0 = vmmov 0   ;;  %v395_v1 = vmov 0.0   ;;  %v60_v2 = vld [vmem:[#allocation4] sm:$0xff]  ;;  %v230_v30 = vlaneseq }
  0x36   :  { %292 = vmatprep.subr.bf16.mxu0 %v393_v0  ;;  %278 = vmatprep.mubr.msk.f32.mxu0 %vm394_vm0, %v395_v1  ;;  %v61_v3 = vld [vmem:[#allocation4 + $0x8] sm:$0xff]  ;;  %v62_v4 = vld [vmem:[#allocation4 + $0x10] sm:$0xff]  ;;  %v63_v6 = vld [vmem:[#allocation4 + $0x18] sm:$0xff]  ;;  %vm71_vm1 = vcmask 261120  }
  0x37   :  { %298 = vmatprep.subr.bf16.mxu1 %v393_v0  ;;  %289 = vmatprep.mubr.msk.f32.mxu1 %vm394_vm0, %v395_v1  ;;  %v293_v5 = vpack.c.bf16 %v61_v3, %v60_v2  ;;  %v296_v7 = vpack.c.bf16 %v63_v6, %v62_v4  ;;  %v59_v8 = vld [vmem:[#allocation2] sm:$0xff]  ;;  %v146_v9 = vld [vmem:[#allocation6] sm:$0xff]  ;;  %v147_v10 = vld [vmem:[#allocation6 + $0x8] sm:$0xff]  ;;  %v231_v33 = vand.u32 127, %v230_v30 }
  0x38   :  { %v148_v11 = vld [vmem:[#allocation6 + $0x10] sm:$0xff]  ;;  %v299_v12 = vpack.c.bf16 %v147_v10, %v146_v9  ;;  %v149_v13 = vld [vmem:[#allocation6 + $0x18] sm:$0xff] }
  0x39   :  { %294 = vmatpush3.bf16.msra.mxu0 %v293_v5  ;;  %v302_v14 = vpack.c.bf16 %v149_v13, %v148_v11  ;;  %v256_v15 = vld [vmem:[%s482_s2] ss:$0 sm:$0xff]  ;;  %vm232_vm3 = vcmp.lt.s32.totalorder %v231_v33, 16 }
  0x3a   :  { %295 = vmatprep.subr.bf16.mxu0 %v393_v0  ;;  %300 = vmatpush3.bf16.msra.mxu1 %v299_v12  ;;  %v258_v20 = vld [vmem:[%s484_s4] ss:$0 sm:$0xff] }
  0x3b   :  { %301 = vmatprep.subr.bf16.mxu1 %v393_v0 }
  0x3d   :  { %297 = vmatpush3.bf16.msra.mxu0 %v296_v7 }
  0x3e   :  { %303 = vmatpush3.bf16.msra.mxu1 %v302_v14 }
  0x40   :  { %279 = vmatmul.mubr.msk.f32.vlgmr.msra.gmra.mrb[0].mxu0 %vm71_vm1, %v59_v8 }
 0x113   :  { %v141_v16 = vpop.f32.mrb[0].mxu0 }
 0x114   :  { %v142_v17 = vadd.f32 %v256_v15, %v141_v16  ;;  %v280_v18 = vpop.f32.mrb[1].mxu0 }
 0x116   :  { %312 = vtanh.f32 %v142_v17 }
 0x120   :  { %v313_v19 = vpop.eup %312 }
 0x121   :  { %290 = vmatmul.mubr.msk.f32.vlgmr.msra.gmra.mrb[0].mxu1 %vm71_vm1, %v313_v19 }
 0x1f4   :  { %v226_v21 = vpop.f32.mrb[0].mxu1 }
 0x1f5   :  { %v227_v22 = vadd.f32 %v258_v20, %v226_v21  ;;  %v291_v23 = vpop.f32.mrb[1].mxu1 }
 0x1f7   :  { %v234_v24 = vand.u32 2147483647, %v227_v22  ;;  %v233_v37 = vmax.f32 %v227_v22, 0.0 }
 0x1f9   :  { %v235_v25 = vsub.f32 0.0, %v234_v24 }
 0x1fb   :  { %v236_v26 = vmul.f32 1.442695, %v235_v25 }
 0x1fd   :  { %314 = vpow2.f32 %v236_v26 }
 0x207   :  { %v315_v27 = vpop.eup %314 }
 0x208   :  { %v238_v28 = vadd.f32 1.0, %v315_v27  ;;  %v241_v29 = vmul.f32 -0.5, %v315_v27  ;;  %v244_v32 = vand.u32 2147483647, %v315_v27 }
 0x20a   :  { %316 = vlog2.f32 %v238_v28  ;;  %v242_v31 = vadd.f32 1.0, %v241_v29  ;;  %vm245_vm2 = vcmp.lt.f32.partialorder %v244_v32, 0.0004427343 }
 0x20c   :  { %v243_v36 = vmul.f32 %v315_v27, %v242_v31 }
 0x214   :  { %v317_v34 = vpop.eup %316 }
 0x215   :  { %v240_v35 = vmul.f32 0.6931472, %v317_v34 }
 0x217   :  { %v246_v38 = vsel %vm245_vm2, %v243_v36, %v240_v35 }
 0x218   :  { %v247_v39 = vadd.f32 %v246_v38, %v233_v37 }
 0x21a   :  { %v248_v40 = vsel %vm232_vm3, %v227_v22, %v247_v39 }
 0x21b   :  { %249 = vst.msk [vmem:[%s485_s5] sm:$0xff] %vm71_vm1, %v248_v40 }
 0x21c   :  { %254 = vsyncpa [#allocation3], 1 }
 0x21d   :  { %255 = vsyncpa [#allocation5], 1 }

</bundles_post_ra>
